<compile_context>
chip_gen: v6e
topology: v6e:2x2x1
jax: 0.10.0
libtpu: 0.0.40
codegen_flags: <defaults>
</compile_context>

<pallas_src>
import jax
import jax.numpy as jnp
from jax.experimental import pallas as pl
from jax.experimental.pallas import tpu as pltpu

JOINTS_IDX = (0, 1, 2, 4, 5, 7, 8, 12, 15, 16, 17, 18, 19, 20, 21)
NUM_JOINTS_SMPL = 24
NUM_JOINTS_OUT = len(JOINTS_IDX)   # 15
J_PAD = 16                         # pad 15 -> 16 output columns (tile-friendly)
ROW_TILE = 16                      # bf16 sublane tile for the mesh row axis


def _round_up(x, m):
    return (x + m - 1) // m * m


def _joint_regress_kernel(mesh_ref, jreg_ref, out_ref):
    # mesh_ref: (TM, Vp) bf16   jreg_ref: (Vp, J_PAD) bf16   out_ref: (TM, J_PAD) f32
    out_ref[...] = jnp.dot(
        mesh_ref[...], jreg_ref[...], preferred_element_type=jnp.float32
    )


def regress_joints(j_regressor: jax.Array, pred_mesh: jax.Array) -> jax.Array:
    """(J_regressor @ mesh)[:, JOINTS_IDX] -> (B, 15, 3) via a single Pallas matmul."""
    B, V, C = pred_mesh.shape
    assert C == 3 and j_regressor.shape == (NUM_JOINTS_SMPL, V)

    Vp = _round_up(V, 128)

    # Fold the static joint selection into the weight, zero-pad rows 15->16 and
    # the contraction axis V->Vp, and transpose so the dot is a plain (M,K)@(K,N).
    jsel = j_regressor[jnp.array(JOINTS_IDX, dtype=jnp.int32), :]          # (15, V)
    jsel = jnp.pad(jsel, ((0, J_PAD - NUM_JOINTS_OUT), (0, Vp - V)))       # (16, Vp)
    jreg_t = jsel.T.astype(jnp.bfloat16)                                   # (Vp, 16)

    # Lane-dense mesh: (B, V, 3) -> (B, 3, V) -> (B*3, Vp); V on the lane axis.
    mesh2d = jnp.transpose(pred_mesh, (0, 2, 1)).reshape(B * 3, V)
    mesh2d = jnp.pad(mesh2d, ((0, 0), (0, Vp - V))).astype(jnp.bfloat16)

    # Row chunking: split across the two v7x TensorCores only when each chunk
    # holds at least one full bf16 sublane tile of real rows; otherwise a
    # single grid step avoids wasted padding rows and pipeline overhead.
    M = B * 3
    num_chunks = 2 if M >= 2 * ROW_TILE else 1
    TM = _round_up(pl.cdiv(M, num_chunks), ROW_TILE)
    Mp = num_chunks * TM
    mesh2d = jnp.pad(mesh2d, ((0, Mp - M), (0, 0)))                        # (Mp, Vp)

    out = pl.pallas_call(
        _joint_regress_kernel,
        out_shape=jax.ShapeDtypeStruct((Mp, J_PAD), jnp.float32),
        grid=(num_chunks,),
        in_specs=[
            pl.BlockSpec((TM, Vp), lambda i: (i, 0)),       # mesh row-chunk
            pl.BlockSpec((Vp, J_PAD), lambda i: (0, 0)),    # weight, resident
        ],
        out_specs=pl.BlockSpec((TM, J_PAD), lambda i: (i, 0)),
        compiler_params=pltpu.CompilerParams(
            dimension_semantics=("parallel",),
        ),
    )(mesh2d, jreg_t)

    # (Mp, 16) -> (B, 3, 15) -> (B, 15, 3): trace-time glue on a tiny tensor.
    joints = out[:M, :NUM_JOINTS_OUT].reshape(B, 3, NUM_JOINTS_OUT)
    return jnp.transpose(joints, (0, 2, 1))


def votehmr_forward(ret_dict: dict, j_regressor: jax.Array) -> dict:
    """Mirrors votehmr.forward's output assembly for the joint-regression path.

    `ret_dict` plays the role of the combined outputs of the (external) PCT pose
    network, global/local regressors and SMPL body model; it must contain
    'mesh_out' of shape (B, V, 3).
    """
    # TODO(synk): PCTv2_SegReg, GlobalParamRegressor, LocalParamRegressor and the
    # smplx SMPL body model are external/undefined in the reference source; their
    # fused output ('mesh_out' vertices etc.) is taken as input instead of being
    # re-implemented. Only the joint-regression hot path runs in Pallas.
    verts = ret_dict["mesh_out"]
    out = dict(ret_dict)
    out["joints"] = regress_joints(j_regressor, verts)      # (B, 15, 3)
    return out


if __name__ == "__main__":
    key = jax.random.PRNGKey(0)
    k_reg, k_mesh = jax.random.split(key)

    B = 2          # batch
    V = 512        # stand-in for SMPL's 6890 vertices

    # Deterministic synthetic J_regressor: nonnegative rows normalized to sum 1
    # (same structural property as the real SMPL joint regressor).
    j_regressor = jax.random.uniform(k_reg, (NUM_JOINTS_SMPL, V), dtype=jnp.float32)
    j_regressor = j_regressor / jnp.sum(j_regressor, axis=1, keepdims=True)

    # Synthetic mesh vertices standing in for the body-model output.
    pred_mesh = jax.random.normal(k_mesh, (B, V, 3), dtype=jnp.float32)
    ret_dict = {"mesh_out": pred_mesh}

    out = votehmr_forward(ret_dict, j_regressor)
    joints = jax.block_until_ready(out["joints"])

    # Reference in plain f32 JAX: (J @ mesh)[:, JOINTS_IDX]
    ref = jnp.einsum("jv,bvc->bjc", j_regressor, pred_mesh)[
        :, jnp.array(JOINTS_IDX, dtype=jnp.int32)
    ]
    assert joints.shape == (B, NUM_JOINTS_OUT, 3)
    # bf16 inputs + f32 accumulation vs pure-f32 reference -> loose tolerance.
    max_err = float(jnp.max(jnp.abs(joints - ref)))
    assert jnp.allclose(joints, ref, atol=1e-2, rtol=1e-2), max_err

    print("KERNEL_OK")
</pallas_src>

<mosaic_0001>
module attributes {stable_mosaic.version = 11 : i64} {
  func.func @_joint_regress_kernel(%arg0: i32, %arg1: memref<16x512xbf16, #tpu.memory_space<vmem>>, %arg2: memref<512x16xbf16, #tpu.memory_space<vmem>>, %arg3: memref<16x16xf32, #tpu.memory_space<vmem>>) attributes {dimension_semantics = [#tpu.dimension_semantics<parallel>], iteration_bounds = array<i64: 1>, scalar_prefetch = 0 : i64, scratch_operands = 0 : i64, tpu.core_type = #tpu.core_type<tc>, window_params = [{transform_indices = @transform_0, window_bounds = array<i64: 16, 512>}, {pipeline_mode = #tpu.pipeline_mode<synchronous>, transform_indices = @transform_1, window_bounds = array<i64: 512, 16>}, {transform_indices = @transform_2, window_bounds = array<i64: 16, 16>}]} {
    %c0 = arith.constant 0 : index
    %c0_0 = arith.constant 0 : index
    %0 = vector.load %arg1[%c0, %c0_0] : memref<16x512xbf16, #tpu.memory_space<vmem>>, vector<16x512xbf16>
    %c0_1 = arith.constant 0 : index
    %c0_2 = arith.constant 0 : index
    %1 = vector.load %arg2[%c0_1, %c0_2] : memref<512x16xbf16, #tpu.memory_space<vmem>>, vector<512x16xbf16>
    %cst = arith.constant dense<0.000000e+00> : vector<16x16xf32>
    %2 = tpu.matmul %0, %1, %cst {dimension_numbers = #tpu.dot_dimension_numbers<[1], [0], [0], [1], [0, 0, 1, 1], [], []>} : vector<16x512xbf16>, vector<512x16xbf16>, vector<16x16xf32> -> vector<16x16xf32>
    %c0_3 = arith.constant 0 : index
    %c0_4 = arith.constant 0 : index
    %3 = vector.load %arg3[%c0_3, %c0_4] : memref<16x16xf32, #tpu.memory_space<vmem>>, vector<16x16xf32>
    tpu.vector_store %arg3[%c0_3, %c0_4], %2 {strides = array<i32>} : memref<16x16xf32, #tpu.memory_space<vmem>>, vector<16x16xf32>,
    return
  }
  func.func @transform_0(%arg0: i32) -> (i32, i32) {
    %c0_i32 = arith.constant 0 : i32
    %c0_i32_0 = arith.constant 0 : i32
    return %arg0, %c0_i32 : i32, i32
  }
  func.func @transform_1(%arg0: i32) -> (i32, i32) {
    %c0_i32 = arith.constant 0 : i32
    %c0_i32_0 = arith.constant 0 : i32
    %c0_i32_1 = arith.constant 0 : i32
    return %c0_i32, %c0_i32_0 : i32, i32
  }
  func.func @transform_2(%arg0: i32) -> (i32, i32) {
    %c0_i32 = arith.constant 0 : i32
    %c0_i32_0 = arith.constant 0 : i32
    return %arg0, %c0_i32 : i32, i32
  }
}

</mosaic_0001>

<bundles_post_ra>
// kernel: tpu_custom_call.1
= control target key start
LH: loop header
LB: loop body
LE: loop exit
PB: predicated region body
PF: predicated region fallthrough
CT: control target
= control target key end

     0   :  { %s666_s0 = inlined_call_operand.vmem [shape: bf16[16,512], index: 0, kind: input, shape index: {}]   ;;  %s667_s1 = inlined_call_operand.vmem [shape: bf16[512,16], index: 1, kind: input, shape index: {}]   ;;  %s668_s2 = inlined_call_operand.hbm [shape: f32[16,16], index: 2, kind: output, shape index: {}]  }
   0x1   :  { %v477_v0 = vld [vmem:[%s667_s1 + $0x78] sm:$0xff]   ;;  %v481_v4 = vld [vmem:[%s667_s1 + $0x70] sm:$0xff]   ;;  %v485_v8 = vld [vmem:[%s667_s1 + $0x68] sm:$0xff]  }
   0x2   :  { %v478_v1 = vld [vmem:[%s667_s1 + $0xf8] sm:$0xff]   ;;  %430 = vmatprep.subr.bf16.mxu0 %v477_v0  ;;  %v482_v5 = vld [vmem:[%s667_s1 + $0xf0] sm:$0xff]   ;;  %v486_v9 = vld [vmem:[%s667_s1 + $0xe8] sm:$0xff]  }
   0x3   :  { %v479_v2 = vld [vmem:[%s667_s1 + $0x38] sm:$0xff]   ;;  %452 = vmatprep.subr.bf16.mxu1 %v478_v1  ;;  %v483_v6 = vld [vmem:[%s667_s1 + $0x30] sm:$0xff]   ;;  %v487_v10 = vld [vmem:[%s667_s1 + $0x28] sm:$0xff]  }
   0x4   :  { %v480_v3 = vld [vmem:[%s667_s1 + $0xb8] sm:$0xff]   ;;  %431 = vmatpush3.bf16.msra.mxu0 %v479_v2  ;;  %v484_v7 = vld [vmem:[%s667_s1 + $0xb0] sm:$0xff]   ;;  %v488_v11 = vld [vmem:[%s667_s1 + $0xa8] sm:$0xff]  }
   0x5   :  { %453 = vmatpush3.bf16.msra.mxu1 %v480_v3  ;;  %432 = vmatprep.subr.bf16.mxu0 %v481_v4  ;;  %v489_v12 = vld [vmem:[%s667_s1 + $0x60] sm:$0xff]   ;;  %v493_v16 = vld [vmem:[%s667_s1 + $0x58] sm:$0xff]   ;;  %v497_v20 = vld [vmem:[%s667_s1 + $0x50] sm:$0xff]  }
   0x6   :  { %454 = vmatprep.subr.bf16.mxu1 %v482_v5  ;;  %v490_v13 = vld [vmem:[%s667_s1 + $0xe0] sm:$0xff]   ;;  %v494_v17 = vld [vmem:[%s667_s1 + $0xd8] sm:$0xff]   ;;  %v498_v21 = vld [vmem:[%s667_s1 + $0xd0] sm:$0xff]  }
   0x7   :  { %v491_v14 = vld [vmem:[%s667_s1 + $0x20] sm:$0xff]   ;;  %v495_v18 = vld [vmem:[%s667_s1 + $0x18] sm:$0xff]   ;;  %v499_v22 = vld [vmem:[%s667_s1 + $0x10] sm:$0xff]  }
   0x8   :  { %433 = vmatpush3.bf16.msra.mxu0 %v483_v6  ;;  %v492_v15 = vld [vmem:[%s667_s1 + $0xa0] sm:$0xff]   ;;  %v496_v19 = vld [vmem:[%s667_s1 + $0x98] sm:$0xff]   ;;  %v500_v23 = vld [vmem:[%s667_s1 + $0x90] sm:$0xff]  }
   0x9   :  { %455 = vmatpush3.bf16.msra.mxu1 %v484_v7  ;;  %434 = vmatprep.subr.bf16.mxu0 %v485_v8  ;;  %v501_v24 = vld [vmem:[%s667_s1 + $0x48] sm:$0xff]   ;;  %v505_v28 = vld [vmem:[%s667_s1 + $0x40] sm:$0xff]  }
   0xa   :  { %456 = vmatprep.subr.bf16.mxu1 %v486_v9  ;;  %v502_v25 = vld [vmem:[%s667_s1 + $0xc8] sm:$0xff]   ;;  %v506_v29 = vld [vmem:[%s667_s1 + $0xc0] sm:$0xff]  }
   0xb   :  { %v503_v26 = vld [vmem:[%s667_s1 + $0x8] sm:$0xff]   ;;  %v507_v30 = vld [vmem:[%s667_s1] sm:$0xff]  }
   0xc   :  { %435 = vmatpush3.bf16.msra.mxu0 %v487_v10  ;;  %v504_v27 = vld [vmem:[%s667_s1 + $0x88] sm:$0xff]   ;;  %v508_v31 = vld [vmem:[%s667_s1 + $0x80] sm:$0xff]  }
   0xd   :  { %457 = vmatpush3.bf16.msra.mxu1 %v488_v11  ;;  %436 = vmatprep.subr.bf16.mxu0 %v489_v12  ;;  %v509_v32 = vld [vmem:[%s666_s0] ss:$16 sps:$4 sm:$0xff]   ;;  %v511_v33 = vld [vmem:[%s666_s0 + $0x4] ss:$16 sps:$4 sm:$0xff]   ;;  %v512_v34 = vld [vmem:[%s666_s0 + $0x8] ss:$16 sps:$4 sm:$0xff]  }
   0xe   :  { %458 = vmatprep.subr.bf16.mxu1 %v490_v13  ;;  %v514_v35 = vld [vmem:[%s666_s0 + $0xc] ss:$16 sps:$4 sm:$0xff]  }
  0x10   :  { %437 = vmatpush3.bf16.msra.mxu0 %v491_v14 }
  0x11   :  { %459 = vmatpush3.bf16.msra.mxu1 %v492_v15  ;;  %438 = vmatprep.subr.bf16.mxu0 %v493_v16 }
  0x12   :  { %460 = vmatprep.subr.bf16.mxu1 %v494_v17 }
  0x14   :  { %439 = vmatpush3.bf16.msra.mxu0 %v495_v18 }
  0x15   :  { %461 = vmatpush3.bf16.msra.mxu1 %v496_v19  ;;  %440 = vmatprep.subr.bf16.mxu0 %v497_v20 }
  0x16   :  { %462 = vmatprep.subr.bf16.mxu1 %v498_v21 }
  0x18   :  { %441 = vmatpush3.bf16.msra.mxu0 %v499_v22 }
  0x19   :  { %463 = vmatpush3.bf16.msra.mxu1 %v500_v23  ;;  %442 = vmatprep.subr.bf16.mxu0 %v501_v24 }
  0x1a   :  { %464 = vmatprep.subr.bf16.mxu1 %v502_v25 }
  0x1c   :  { %443 = vmatpush3.bf16.msra.mxu0 %v503_v26 }
  0x1d   :  { %465 = vmatpush3.bf16.msra.mxu1 %v504_v27  ;;  %444 = vmatprep.subr.bf16.mxu0 %v505_v28 }
  0x1e   :  { %466 = vmatprep.subr.bf16.mxu1 %v506_v29 }
  0x20   :  { %445 = vmatpush3.bf16.msra.mxu0 %v507_v30 }
  0x21   :  { %467 = vmatpush3.bf16.msra.mxu1 %v508_v31 }
  0x22   :  { %7 = vsyncpa [#allocation3], 0  ;;  %325 = vmatprep.mubr.bf16.mxu0 %v511_v33  ;;  %366 = vmatprep.mubr.bf16.mxu1 %v514_v35  ;;  %vm375_vm0 = vcmask 130048   ;;  %s537_s1 = smov [#allocation2]  }
  0x23   :  { %326 = vmatmul.mubr.bf16.vlgmr.msra.gmra.mxu0 %v509_v32  ;;  %s383_s25 = sshll.u32 %s537_s1, 4  ;;  %s384_s25 = int_to_ptr.vmem [resolvable:$true] %s383_s25 }
  0x24   :  { %367 = vmatmul.mubr.bf16.vlgmr.msra.gmra.mxu1 %v512_v34  ;;  %s515_s0 = scalar_lea.vmem %s384_s25, 256  ;;  %p520_p1 = scmp.lt.s32.totalorder %s384_s25, %s384_s25 }
  0x25   :  { %p516_p0 = scmp.ne.s32.totalorder %s384_s25, %s515_s0  ;;  %p521_p2 = scmp.lt.s32.totalorder %s515_s0, %s515_s0 }
  0x27   :  { %p522_p3 = por %p521_p2, %p520_p1 }
  0x29   :  { %p523_p4 = pnand %p522_p3, %p516_p0 }
  0xe3   :  { %v446_v36 = vpop.f32.mrf.mxu0 }
  0xe4   :  { %v468_v37 = vpop.f32.mrf.mxu1 }
  0xe5   :  { %v447_v38 = vpop.f32.mrf.mxu0 }
  0xe6   :  { %v448_v39 = vadd.f32 %v447_v38, %v446_v36  ;;  %v469_v40 = vpop.f32.mrf.mxu1 }
  0xe7   :  { %v470_v41 = vadd.f32 %v469_v40, %v468_v37  ;;  %v449_v42 = vpop.f32.mrf.mxu0 }
  0xe8   :  { %v471_v43 = vpop.f32.mrf.mxu1 }
  0xe9   :  { %v369_v44 = vadd.f32 %v470_v41, %v448_v39  ;;  %v450_v45 = vpop.f32.mrf.mxu0 }
  0xea   :  { %v451_v46 = vadd.f32 %v450_v45, %v449_v42  ;;  %v472_v47 = vpop.f32.mrf.mxu1 }
  0xeb   :  { %376 = vst.msk [vmem:[#allocation2] sm:$0xff] %vm375_vm0, %v369_v44  ;;  %v473_v48 = vadd.f32 %v472_v47, %v471_v43 }
  0xed   :  { %v372_v49 = vadd.f32 %v473_v48, %v451_v46 }
  0xef   :  { %377 = vst.msk [vmem:[#allocation2 + $0x8] sm:$0xff] %vm375_vm0, %v372_v49 }
  0xf0   :  { %526 = shalt.err (!%p523_p4)
}
  0xf1   :  { %s538_s26 = smov 128   ;;  %s539_s27 = smov 8  }
  0xf2   :  { %389 = dma.vmem_to_hbm [thread:$0]  %s384_s25, 256, %s668_s2, [#allocation3], %s538_s26, %s538_s26, %s539_s27  }
  0xf3   :  { %535 = dma.done.wait [#allocation3], 256  }
  0xf4   :  { %536 = vsyncadd [#allocation3], 4294967040 }
  0xf5   :  { %393 = vsyncpa [#allocation3], 1 }

</bundles_post_ra>
